<compile_context>
chip_gen: v7x
topology: tpu7x:2x2x1
jax: 0.10.0
libtpu: 0.0.40
codegen_flags: <defaults>
</compile_context>

<pallas_src>
import numpy as np
import jax
import jax.numpy as jnp
from jax.experimental import pallas as pl
from jax.experimental.pallas import tpu as pltpu


def _largest_divisor_leq(n, cap):
    best = 1
    for t in range(1, min(n, cap) + 1):
        if n % t == 0:
            best = t
    return best


def _pick_head_block(h, d, lane=128, cap=512):
    # Smallest divisor hb of h with hb*d a multiple of the lane width.
    for hb in range(1, h + 1):
        if h % hb == 0 and (hb * d) % lane == 0 and hb * d <= cap:
            return hb
    for hb in range(1, h + 1):
        if h % hb == 0 and (hb * d) % lane == 0:
            return hb
    return h  # block == full (head*dim) extent is always a legal block shape


def ctno_kernel(index_ref, flag_ref, x_ref, coef_ref, cos_ref, decay_ref,
                o_ref, a2_ref, full_ref):
    # Per grid step (one block of Hb heads folded into the lane axis):
    #   index_ref: SMEM (L,) int32        flag_ref:  SMEM (1,) int32
    #   x_ref:     (B, N, HDb)            coef_ref:  (K2, HDb)
    #   cos_ref:   (K2, 2N, HDb)          decay_ref: (2N, HDb)
    #   o_ref:     (B, L, HDb)
    #   a2_ref:    VMEM (4N, HDb) f32     full_ref:  VMEM (B, 2N, HDb) f32
    b_sz, n, hdb = x_ref.shape
    k2 = coef_ref.shape[0]
    two_n = decay_ref.shape[0]
    l_out = o_ref.shape[1]
    tile = _largest_divisor_leq(two_n, 32)
    n_tiles = two_n // tile

    # ---- a = decay * sum_k coef[k] * cos[k]; store doubled buffer [a; a] ----
    @pl.loop(0, n_tiles)
    def _a_tile(ti):
        t0 = pl.multiple_of(ti * tile, tile)
        a_t = jnp.zeros((tile, hdb), jnp.float32)
        for k in range(k2):  # K2 is small and static
            a_t = a_t + (cos_ref[k, pl.ds(t0, tile), :].astype(jnp.float32)
                         * coef_ref[pl.ds(k, 1), :].astype(jnp.float32))
        a_t = a_t * decay_ref[pl.ds(t0, tile), :].astype(jnp.float32)
        a2_ref[pl.ds(t0, tile), :] = a_t
        a2_ref[pl.ds(two_n + t0, tile), :] = a_t

    # ---- circular convolution with the (implicitly zero-padded) x ----
    # full[b, t, :] = sum_s x[b, s, :] * a2[2N + t - s, :]
    @pl.loop(0, n_tiles)
    def _conv_tile(ti):
        t0 = pl.multiple_of(ti * tile, tile)

        def body(s, acc):
            xs = x_ref[:, pl.ds(s, 1), :].astype(jnp.float32)        # (B, 1, HDb)
            win = a2_ref[pl.ds(two_n + t0 - s, tile), :]             # (tile, HDb)
            return acc + xs * win[None, :, :]

        acc = jax.lax.fori_loop(0, n, body,
                                jnp.zeros((b_sz, tile, hdb), jnp.float32))
        full_ref[:, pl.ds(t0, tile), :] = acc

    # ---- index_select(full, -2, index) ----
    is_contig = flag_ref[0] == 1

    @pl.when(is_contig)
    def _fast():  # contiguous index (e.g. arange): one slab copy
        start = index_ref[0]
        o_ref[...] = full_ref[:, pl.ds(start, l_out), :].astype(o_ref.dtype)

    @pl.when(jnp.logical_not(is_contig))
    def _slow():  # general gather: rolled loop, full-lane-width row copies
        @pl.loop(0, l_out)
        def _row(l):
            row = full_ref[:, pl.ds(index_ref[l], 1), :]
            o_ref[:, pl.ds(l, 1), :] = row.astype(o_ref.dtype)


def ctno_forward(x, coef, decay, cos, index):
    """x: (B,H,N,D), coef: (H,1,K2,D), decay: (H,2N,1), cos: (H,2N,K2,D),
       index: (L,) int  ->  (B, H, L, D)."""
    B, H, N, D = x.shape
    Hc, two_n, K2, Dc = cos.shape
    assert Hc == H and Dc == D and two_n == 2 * N
    assert coef.shape == (H, 1, K2, D)
    assert decay.shape == (H, two_n, 1)
    L = int(index.shape[0])

    Hb = _pick_head_block(H, D)
    HDb = Hb * D
    n_hblk = H // Hb

    # Lane-dense layout: fold (head, dim) into the last axis. Wrapper-side
    # layout plumbing only — done once by XLA outside the kernel.
    x_l = jnp.transpose(x, (0, 2, 1, 3)).reshape(B, N, H * D)
    coef_l = jnp.transpose(coef[:, 0], (1, 0, 2)).reshape(K2, H * D)
    cos_l = jnp.transpose(cos, (2, 1, 0, 3)).reshape(K2, two_n, H * D)
    decay_l = jnp.broadcast_to(jnp.transpose(decay, (1, 0, 2)),
                               (two_n, H, D)).reshape(two_n, H * D)

    idx32 = index.astype(jnp.int32)
    contig = jnp.all(idx32 == idx32[0] + jnp.arange(L, dtype=jnp.int32))
    flag = contig.astype(jnp.int32).reshape((1,))

    out_l = pl.pallas_call(
        ctno_kernel,
        out_shape=jax.ShapeDtypeStruct((B, L, H * D), x.dtype),
        grid_spec=pltpu.PrefetchScalarGridSpec(
            num_scalar_prefetch=2,
            grid=(n_hblk,),
            in_specs=[
                pl.BlockSpec((B, N, HDb), lambda hb, idx, fl: (0, 0, hb)),       # x
                pl.BlockSpec((K2, HDb), lambda hb, idx, fl: (0, hb)),            # coef
                pl.BlockSpec((K2, two_n, HDb), lambda hb, idx, fl: (0, 0, hb)),  # cos
                pl.BlockSpec((two_n, HDb), lambda hb, idx, fl: (0, hb)),         # decay
            ],
            out_specs=pl.BlockSpec((B, L, HDb), lambda hb, idx, fl: (0, 0, hb)),
            scratch_shapes=[
                pltpu.VMEM((2 * two_n, HDb), jnp.float32),   # doubled kernel [a; a]
                pltpu.VMEM((B, two_n, HDb), jnp.float32),    # full circular conv
            ],
        ),
        compiler_params=pltpu.CompilerParams(
            dimension_semantics=("parallel",)),
    )(idx32, flag, x_l, coef_l, cos_l, decay_l)

    return jnp.transpose(out_l.reshape(B, L, H, D), (0, 2, 1, 3))


def ctno_reference_np(x, coef, decay, cos, index):
    # Direct NumPy transcription of the PyTorch forward (rfft/irfft path).
    x = np.asarray(x, dtype=np.float64)
    coef = np.asarray(coef, dtype=np.float64)
    decay = np.asarray(decay, dtype=np.float64)
    cos = np.asarray(cos, dtype=np.float64)
    index = np.asarray(index)
    n = x.shape[-2]
    a = decay * np.sum(coef * cos, axis=-2)          # (H, 2N, D)
    a = a[None]                                       # (1, H, 2N, D)
    y = np.fft.rfft(x, 2 * n, axis=-2)
    v = np.fft.rfft(a, 2 * n, axis=-2)
    u = v * y
    out = np.fft.irfft(u, 2 * n, axis=-2)
    return np.take(out, index, axis=-2)


if __name__ == "__main__":
    # Small shapes consistent with the module: h heads, per-head dim, basis size k.
    B, H, N, D, K = 2, 4, 8, 32, 16
    K2 = K // 2
    TWO_N = 2 * N

    key = jax.random.PRNGKey(0)
    kx, kc = jax.random.split(key, 2)

    x = jax.random.normal(kx, (B, H, N, D), dtype=jnp.float32)
    coef = jax.random.normal(kc, (H, 1, K2, D), dtype=jnp.float32)  # nn.Parameter(randn(h,1,k//2,dim))

    pos = jnp.arange(TWO_N, dtype=jnp.float32)
    freq = jnp.arange(1, K2 + 1, dtype=jnp.float32)
    cos_basis = jnp.cos(jnp.pi * pos[:, None] * freq[None, :] / TWO_N)   # (2N, K2)
    cos = jnp.broadcast_to(cos_basis[None, :, :, None],
                           (H, TWO_N, K2, D)).astype(jnp.float32)

    lam = 0.05 * (jnp.arange(H, dtype=jnp.float32) + 1.0)
    decay = jnp.exp(-lam[:, None, None] * pos[None, :, None]).astype(jnp.float32)  # (H, 2N, 1)

    # Contiguous index (take the first N outputs) -> exercises the slab-copy fast path.
    index = jnp.arange(N, dtype=jnp.int32)
    out = jax.block_until_ready(ctno_forward(x, coef, decay, cos, index))
    ref = ctno_reference_np(x, coef, decay, cos, index)
    np.testing.assert_allclose(np.asarray(out), ref, rtol=2e-4, atol=2e-3)

    # Non-contiguous index -> exercises the rolled gather path.
    index2 = jnp.array([3, 0, 15, 7, 2, 9, 1, 12], dtype=jnp.int32)
    out2 = jax.block_until_ready(ctno_forward(x, coef, decay, cos, index2))
    ref2 = ctno_reference_np(x, coef, decay, cos, index2)
    np.testing.assert_allclose(np.asarray(out2), ref2, rtol=2e-4, atol=2e-3)

    print("KERNEL_OK")
</pallas_src>

<mosaic_0001>
module attributes {stable_mosaic.version = 11 : i64} {
  func.func @ctno_kernel(%arg0: i32, %arg1: memref<8xi32, #tpu.memory_space<smem>>, %arg2: memref<1xi32, #tpu.memory_space<smem>>, %arg3: memref<2x8x128xf32, #tpu.memory_space<vmem>>, %arg4: memref<8x128xf32, #tpu.memory_space<vmem>>, %arg5: memref<8x16x128xf32, #tpu.memory_space<vmem>>, %arg6: memref<16x128xf32, #tpu.memory_space<vmem>>, %arg7: memref<2x8x128xf32, #tpu.memory_space<vmem>>, %arg8: memref<32x128xf32, #tpu.memory_space<vmem>>, %arg9: memref<2x16x128xf32, #tpu.memory_space<vmem>>) attributes {dimension_semantics = [#tpu.dimension_semantics<parallel>], iteration_bounds = array<i64: 1>, scalar_prefetch = 2 : i64, scratch_operands = 2 : i64, tpu.core_type = #tpu.core_type<tc>, window_params = [{transform_indices = @transform_0, window_bounds = array<i64: 2, 8, 128>}, {transform_indices = @transform_1, window_bounds = array<i64: 8, 128>}, {transform_indices = @transform_2, window_bounds = array<i64: 8, 16, 128>}, {transform_indices = @transform_3, window_bounds = array<i64: 16, 128>}, {transform_indices = @transform_4, window_bounds = array<i64: 2, 8, 128>}]} {
    %c0_i32 = arith.constant 0 : i32
    %c1_i32 = arith.constant 1 : i32
    %0 = arith.muli %c0_i32, %c1_i32 : i32
    %c0_i32_0 = arith.constant 0 : i32
    %1 = arith.addi %c0_i32_0, %0 : i32
    %c16_i32 = arith.constant 16 : i32
    %2 = arith.muli %1, %c16_i32 : i32
    %3 = tpu.assume_multiple %2, 16 : i32
    %cst = arith.constant 0.000000e+00 : f32
    %4 = vector.broadcast %cst : f32 to vector<16x128xf32>
    %c0 = arith.constant 0 : index
    %5 = arith.index_cast %3 : i32 to index
    %c0_1 = arith.constant 0 : index
    %6 = vector.load %arg5[%c0, %5, %c0_1] : memref<8x16x128xf32, #tpu.memory_space<vmem>>, vector<1x16x128xf32>
    %7 = vector.shape_cast %6 : vector<1x16x128xf32> to vector<16x128xf32>
    %c0_2 = arith.constant 0 : index
    %c0_3 = arith.constant 0 : index
    %8 = vector.load %arg4[%c0_2, %c0_3] : memref<8x128xf32, #tpu.memory_space<vmem>>, vector<1x128xf32>
    %9 = vector.broadcast %8 : vector<1x128xf32> to vector<16x128xf32>
    %10 = arith.mulf %7, %9 : vector<16x128xf32>
    %11 = arith.addf %4, %10 : vector<16x128xf32>
    %c1 = arith.constant 1 : index
    %12 = arith.index_cast %3 : i32 to index
    %c0_4 = arith.constant 0 : index
    %13 = vector.load %arg5[%c1, %12, %c0_4] : memref<8x16x128xf32, #tpu.memory_space<vmem>>, vector<1x16x128xf32>
    %14 = vector.shape_cast %13 : vector<1x16x128xf32> to vector<16x128xf32>
    %c1_5 = arith.constant 1 : index
    %c0_6 = arith.constant 0 : index
    %15 = vector.load %arg4[%c1_5, %c0_6] : memref<8x128xf32, #tpu.memory_space<vmem>>, vector<1x128xf32>
    %16 = vector.broadcast %15 : vector<1x128xf32> to vector<16x128xf32>
    %17 = arith.mulf %14, %16 : vector<16x128xf32>
    %18 = arith.addf %11, %17 : vector<16x128xf32>
    %c2 = arith.constant 2 : index
    %19 = arith.index_cast %3 : i32 to index
    %c0_7 = arith.constant 0 : index
    %20 = vector.load %arg5[%c2, %19, %c0_7] : memref<8x16x128xf32, #tpu.memory_space<vmem>>, vector<1x16x128xf32>
    %21 = vector.shape_cast %20 : vector<1x16x128xf32> to vector<16x128xf32>
    %c2_8 = arith.constant 2 : index
    %c0_9 = arith.constant 0 : index
    %22 = vector.load %arg4[%c2_8, %c0_9] : memref<8x128xf32, #tpu.memory_space<vmem>>, vector<1x128xf32>
    %23 = vector.broadcast %22 : vector<1x128xf32> to vector<16x128xf32>
    %24 = arith.mulf %21, %23 : vector<16x128xf32>
    %25 = arith.addf %18, %24 : vector<16x128xf32>
    %c3 = arith.constant 3 : index
    %26 = arith.index_cast %3 : i32 to index
    %c0_10 = arith.constant 0 : index
    %27 = vector.load %arg5[%c3, %26, %c0_10] : memref<8x16x128xf32, #tpu.memory_space<vmem>>, vector<1x16x128xf32>
    %28 = vector.shape_cast %27 : vector<1x16x128xf32> to vector<16x128xf32>
    %c3_11 = arith.constant 3 : index
    %c0_12 = arith.constant 0 : index
    %29 = vector.load %arg4[%c3_11, %c0_12] : memref<8x128xf32, #tpu.memory_space<vmem>>, vector<1x128xf32>
    %30 = vector.broadcast %29 : vector<1x128xf32> to vector<16x128xf32>
    %31 = arith.mulf %28, %30 : vector<16x128xf32>
    %32 = arith.addf %25, %31 : vector<16x128xf32>
    %c4 = arith.constant 4 : index
    %33 = arith.index_cast %3 : i32 to index
    %c0_13 = arith.constant 0 : index
    %34 = vector.load %arg5[%c4, %33, %c0_13] : memref<8x16x128xf32, #tpu.memory_space<vmem>>, vector<1x16x128xf32>
    %35 = vector.shape_cast %34 : vector<1x16x128xf32> to vector<16x128xf32>
    %c4_14 = arith.constant 4 : index
    %c0_15 = arith.constant 0 : index
    %36 = vector.load %arg4[%c4_14, %c0_15] : memref<8x128xf32, #tpu.memory_space<vmem>>, vector<1x128xf32>
    %37 = vector.broadcast %36 : vector<1x128xf32> to vector<16x128xf32>
    %38 = arith.mulf %35, %37 : vector<16x128xf32>
    %39 = arith.addf %32, %38 : vector<16x128xf32>
    %c5 = arith.constant 5 : index
    %40 = arith.index_cast %3 : i32 to index
    %c0_16 = arith.constant 0 : index
    %41 = vector.load %arg5[%c5, %40, %c0_16] : memref<8x16x128xf32, #tpu.memory_space<vmem>>, vector<1x16x128xf32>
    %42 = vector.shape_cast %41 : vector<1x16x128xf32> to vector<16x128xf32>
    %c5_17 = arith.constant 5 : index
    %c0_18 = arith.constant 0 : index
    %43 = vector.load %arg4[%c5_17, %c0_18] : memref<8x128xf32, #tpu.memory_space<vmem>>, vector<1x128xf32>
    %44 = vector.broadcast %43 : vector<1x128xf32> to vector<16x128xf32>
    %45 = arith.mulf %42, %44 : vector<16x128xf32>
    %46 = arith.addf %39, %45 : vector<16x128xf32>
    %c6 = arith.constant 6 : index
    %47 = arith.index_cast %3 : i32 to index
    %c0_19 = arith.constant 0 : index
    %48 = vector.load %arg5[%c6, %47, %c0_19] : memref<8x16x128xf32, #tpu.memory_space<vmem>>, vector<1x16x128xf32>
    %49 = vector.shape_cast %48 : vector<1x16x128xf32> to vector<16x128xf32>
    %c6_20 = arith.constant 6 : index
    %c0_21 = arith.constant 0 : index
    %50 = vector.load %arg4[%c6_20, %c0_21] : memref<8x128xf32, #tpu.memory_space<vmem>>, vector<1x128xf32>
    %51 = vector.broadcast %50 : vector<1x128xf32> to vector<16x128xf32>
    %52 = arith.mulf %49, %51 : vector<16x128xf32>
    %53 = arith.addf %46, %52 : vector<16x128xf32>
    %c7 = arith.constant 7 : index
    %54 = arith.index_cast %3 : i32 to index
    %c0_22 = arith.constant 0 : index
    %55 = vector.load %arg5[%c7, %54, %c0_22] : memref<8x16x128xf32, #tpu.memory_space<vmem>>, vector<1x16x128xf32>
    %56 = vector.shape_cast %55 : vector<1x16x128xf32> to vector<16x128xf32>
    %c7_23 = arith.constant 7 : index
    %c0_24 = arith.constant 0 : index
    %57 = vector.load %arg4[%c7_23, %c0_24] : memref<8x128xf32, #tpu.memory_space<vmem>>, vector<1x128xf32>
    %58 = vector.broadcast %57 : vector<1x128xf32> to vector<16x128xf32>
    %59 = arith.mulf %56, %58 : vector<16x128xf32>
    %60 = arith.addf %53, %59 : vector<16x128xf32>
    %61 = arith.index_cast %3 : i32 to index
    %c0_25 = arith.constant 0 : index
    %62 = vector.load %arg6[%61, %c0_25] : memref<16x128xf32, #tpu.memory_space<vmem>>, vector<16x128xf32>
    %63 = arith.mulf %60, %62 : vector<16x128xf32>
    %64 = arith.index_cast %3 : i32 to index
    %c0_26 = arith.constant 0 : index
    %65 = vector.load %arg8[%64, %c0_26] : memref<32x128xf32, #tpu.memory_space<vmem>>, vector<16x128xf32>
    tpu.vector_store %arg8[%64, %c0_26], %63 {strides = array<i32>} : memref<32x128xf32, #tpu.memory_space<vmem>>, vector<16x128xf32>,
    %c16_i32_27 = arith.constant 16 : i32
    %66 = arith.addi %c16_i32_27, %3 : i32
    %67 = arith.index_cast %66 : i32 to index
    %c0_28 = arith.constant 0 : index
    %68 = vector.load %arg8[%67, %c0_28] : memref<32x128xf32, #tpu.memory_space<vmem>>, vector<16x128xf32>
    tpu.vector_store %arg8[%67, %c0_28], %63 {strides = array<i32>} : memref<32x128xf32, #tpu.memory_space<vmem>>, vector<16x128xf32>,
    %c1_i32_29 = arith.constant 1 : i32
    %c0_i32_30 = arith.constant 0 : i32
    %c1_i32_31 = arith.constant 1 : i32
    %69 = arith.muli %c0_i32_30, %c1_i32_31 : i32
    %c0_i32_32 = arith.constant 0 : i32
    %70 = arith.addi %c0_i32_32, %69 : i32
    %c16_i32_33 = arith.constant 16 : i32
    %71 = arith.muli %70, %c16_i32_33 : i32
    %72 = tpu.assume_multiple %71, 16 : i32
    %cst_34 = arith.constant 0.000000e+00 : f32
    %73 = vector.broadcast %cst_34 : f32 to vector<2x16x128xf32>
    %c0_i32_35 = arith.constant 0 : i32
    %c8_i32 = arith.constant 8 : i32
    %74 = arith.addi %c0_i32_35, %c8_i32 : i32
    %c1_i32_36 = arith.constant 1 : i32
    %75 = scf.for %arg10 = %c0_i32_35 to %74 step %c1_i32_36 iter_args(%arg11 = %73) -> (vector<2x16x128xf32>)  : i32 {
      %c0_45 = arith.constant 0 : index
      %85 = arith.index_cast %arg10 : i32 to index
      %c0_46 = arith.constant 0 : index
      %86 = vector.load %arg3[%c0_45, %85, %c0_46] : memref<2x8x128xf32, #tpu.memory_space<vmem>>, vector<2x1x128xf32>
      %c16_i32_47 = arith.constant 16 : i32
      %87 = arith.addi %c16_i32_47, %72 : i32
      %88 = arith.subi %87, %arg10 : i32
      %89 = arith.index_cast %88 : i32 to index
      %c0_48 = arith.constant 0 : index
      %90 = vector.load %arg8[%89, %c0_48] : memref<32x128xf32, #tpu.memory_space<vmem>>, vector<16x128xf32>
      %91 = vector.shape_cast %90 : vector<16x128xf32> to vector<1x16x128xf32>
      %92 = vector.broadcast %86 : vector<2x1x128xf32> to vector<2x16x128xf32>
      %93 = vector.broadcast %91 : vector<1x16x128xf32> to vector<2x16x128xf32>
      %94 = arith.mulf %92, %93 : vector<2x16x128xf32>
      %95 = arith.addf %arg11, %94 : vector<2x16x128xf32>
      scf.yield %95 : vector<2x16x128xf32>
    }
    %c8_i32_37 = arith.constant 8 : i32
    %c0_38 = arith.constant 0 : index
    %76 = arith.index_cast %72 : i32 to index
    %c0_39 = arith.constant 0 : index
    %77 = vector.load %arg9[%c0_38, %76, %c0_39] : memref<2x16x128xf32, #tpu.memory_space<vmem>>, vector<2x16x128xf32>
    tpu.vector_store %arg9[%c0_38, %76, %c0_39], %75 {strides = array<i32>} : memref<2x16x128xf32, #tpu.memory_space<vmem>>, vector<2x16x128xf32>,
    %c1_i32_40 = arith.constant 1 : i32
    %c0_41 = arith.constant 0 : index
    %78 = memref.load %arg2[%c0_41] : memref<1xi32, #tpu.memory_space<smem>>
    %c1_i32_42 = arith.constant 1 : i32
    %79 = arith.cmpi eq, %78, %c1_i32_42 : i32
    %80 = arith.extui %79 : i1 to i32
    %c0_i32_43 = arith.constant 0 : i32
    %81 = arith.cmpi ne, %80, %c0_i32_43 : i32
    scf.if %81 {
      %c0_45 = arith.constant 0 : index
      %85 = memref.load %arg1[%c0_45] : memref<8xi32, #tpu.memory_space<smem>>
      %c0_46 = arith.constant 0 : index
      %86 = arith.index_cast %85 : i32 to index
      %c0_47 = arith.constant 0 : index
      %87 = vector.load %arg9[%c0_46, %86, %c0_47] : memref<2x16x128xf32, #tpu.memory_space<vmem>>, vector<2x8x128xf32>
      %c0_48 = arith.constant 0 : index
      %c0_49 = arith.constant 0 : index
      %c0_50 = arith.constant 0 : index
      %88 = vector.load %arg7[%c0_48, %c0_49, %c0_50] : memref<2x8x128xf32, #tpu.memory_space<vmem>>, vector<2x8x128xf32>
      tpu.vector_store %arg7[%c0_48, %c0_49, %c0_50], %87 {strides = array<i32>} : memref<2x8x128xf32, #tpu.memory_space<vmem>>, vector<2x8x128xf32>,
    } else {
    }
    %true = arith.constant true
    %82 = arith.xori %79, %true : i1
    %83 = arith.extui %82 : i1 to i32
    %c0_i32_44 = arith.constant 0 : i32
    %84 = arith.cmpi ne, %83, %c0_i32_44 : i32
    scf.if %84 {
      %c0_i32_45 = arith.constant 0 : i32
      %c8_i32_46 = arith.constant 8 : i32
      %85 = arith.addi %c0_i32_45, %c8_i32_46 : i32
      %c1_i32_47 = arith.constant 1 : i32
      scf.for %arg10 = %c0_i32_45 to %85 step %c1_i32_47  : i32 {
        %c1_i32_49 = arith.constant 1 : i32
        %86 = arith.muli %arg10, %c1_i32_49 : i32
        %c0_i32_50 = arith.constant 0 : i32
        %87 = arith.addi %c0_i32_50, %86 : i32
        %88 = arith.index_cast %87 : i32 to index
        %89 = memref.load %arg1[%88] : memref<8xi32, #tpu.memory_space<smem>>
        %c0_51 = arith.constant 0 : index
        %90 = arith.index_cast %89 : i32 to index
        %c0_52 = arith.constant 0 : index
        %91 = vector.load %arg9[%c0_51, %90, %c0_52] : memref<2x16x128xf32, #tpu.memory_space<vmem>>, vector<2x1x128xf32>
        %c0_53 = arith.constant 0 : index
        %92 = arith.index_cast %87 : i32 to index
        %c0_54 = arith.constant 0 : index
        %93 = vector.load %arg7[%c0_53, %92, %c0_54] : memref<2x8x128xf32, #tpu.memory_space<vmem>>, vector<2x1x128xf32>
        tpu.vector_store %arg7[%c0_53, %92, %c0_54], %91 {strides = array<i32>} : memref<2x8x128xf32, #tpu.memory_space<vmem>>, vector<2x1x128xf32>,
      }
      %c8_i32_48 = arith.constant 8 : i32
    } else {
    }
    return
  }
  func.func @transform_0(%arg0: i32, %arg1: memref<8xi32, #tpu.memory_space<smem>>, %arg2: memref<1xi32, #tpu.memory_space<smem>>) -> (i32, i32, i32) {
    %c0_i32 = arith.constant 0 : i32
    %c0_i32_0 = arith.constant 0 : i32
    %c0_i32_1 = arith.constant 0 : i32
    return %c0_i32, %c0_i32_0, %arg0 : i32, i32, i32
  }
  func.func @transform_1(%arg0: i32, %arg1: memref<8xi32, #tpu.memory_space<smem>>, %arg2: memref<1xi32, #tpu.memory_space<smem>>) -> (i32, i32) {
    %c0_i32 = arith.constant 0 : i32
    %c0_i32_0 = arith.constant 0 : i32
    return %c0_i32, %arg0 : i32, i32
  }
  func.func @transform_2(%arg0: i32, %arg1: memref<8xi32, #tpu.memory_space<smem>>, %arg2: memref<1xi32, #tpu.memory_space<smem>>) -> (i32, i32, i32) {
    %c0_i32 = arith.constant 0 : i32
    %c0_i32_0 = arith.constant 0 : i32
    %c0_i32_1 = arith.constant 0 : i32
    return %c0_i32, %c0_i32_0, %arg0 : i32, i32, i32
  }
  func.func @transform_3(%arg0: i32, %arg1: memref<8xi32, #tpu.memory_space<smem>>, %arg2: memref<1xi32, #tpu.memory_space<smem>>) -> (i32, i32) {
    %c0_i32 = arith.constant 0 : i32
    %c0_i32_0 = arith.constant 0 : i32
    return %c0_i32, %arg0 : i32, i32
  }
  func.func @transform_4(%arg0: i32, %arg1: memref<8xi32, #tpu.memory_space<smem>>, %arg2: memref<1xi32, #tpu.memory_space<smem>>) -> (i32, i32, i32) {
    %c0_i32 = arith.constant 0 : i32
    %c0_i32_0 = arith.constant 0 : i32
    %c0_i32_1 = arith.constant 0 : i32
    return %c0_i32, %c0_i32_0, %arg0 : i32, i32, i32
  }
}

</mosaic_0001>

<bundles_post_ra>
// kernel: tpu_custom_call.1
= control target key start
LH: loop header
LB: loop body
LE: loop exit
PB: predicated region body
PF: predicated region fallthrough
CT: control target
= control target key end

     0   :  { %s641_s0 = inlined_call_operand.vmem [shape: s32[8], index: 0, kind: input, shape index: {}]   ;;  %s642_s1 = inlined_call_operand.<no memory space> [shape: s32[1], index: 1, kind: input, shape index: {}]   ;;  %s643_s2 = inlined_call_operand.hbm [shape: f32[2,8,128], index: 2, kind: input, shape index: {}]   ;;  %s644_s3 = inlined_call_operand.hbm [shape: f32[8,128], index: 3, kind: input, shape index: {}]   ;;  %s645_s4 = inlined_call_operand.hbm [shape: f32[8,16,128], index: 4, kind: input, shape index: {}]   ;;  %s646_s5 = inlined_call_operand.vmem [shape: f32[16,128], index: 5, kind: input, shape index: {}]   ;;  %s647_s6 = inlined_call_operand.hbm [shape: f32[2,8,128], index: 6, kind: output, shape index: {}]  }
   0x1   :  { %s11_s23 = sshll.u32 %s641_s0, 4  ;;  %15 = sst [smem:[#allocation6]] %s642_s1  ;;  %s12_s23 = int_to_ptr.vmem [resolvable:$true] %s11_s23 }
   0x2   :  { %s362_s26 = scalar_lea.vmem %s12_s23, 16  ;;  %p367_p1 = scmp.lt.s32.totalorder %s12_s23, %s12_s23 }
   0x3   :  { %p363_p0 = scmp.ne.s32.totalorder %s12_s23, %s362_s26  ;;  %p368_p2 = scmp.lt.s32.totalorder %s362_s26, %s362_s26 }
   0x5   :  { %p369_p3 = por %p368_p2, %p367_p1 }
   0x7   :  { %p370_p4 = pnand %p369_p3, %p363_p0 }
   0x9   :  { %373 = shalt.err (!%p370_p4)  }
   0xa   :  { %s518_s27 = smov [#allocation5]  }
   0xb   :  { %14 = dma.vmem_to_smem %s12_s23, 16, %s518_s27, [#allocation4] }
   0xc   :  { %486 = dma.done.wait [#allocation4], 16 }
   0xd   :  { %487 = vsyncadd [#allocation4], 4294967280 }
   0xe   :  { %17 = sfence }
   0xf   :  { %18 = vsyncpa [#allocation8], 0 }
  0x10   :  { %19 = vsyncpa [#allocation11], 0 }
  0x11   :  { %20 = vsyncpa [#allocation9], 0  ;;  %s519_s0 = smov [#allocation10]   ;;  %s520_s29 = smov [#allocation7]  }
  0x12   :  { %s39_s28 = sshll.u32 %s519_s0, 4  ;;  %s26_s1 = sshll.u32 %s520_s29, 4  ;;  %s40_s28 = int_to_ptr.vmem [resolvable:$true] %s39_s28  ;;  %s566_s1 = int_to_ptr.vmem [resolvable:$true] %s26_s1 }
  0x13   :  { %s374_s8 = scalar_lea.hbm %s644_s3, 128 }
  0x14   :  { %p375_p5 = scmp.ne.s32.totalorder %s644_s3, %s374_s8  ;;  %p378_p6 = scmp.lt.u32.totalorder %s374_s8, %s644_s3 }
  0x16   :  { %p380_p7 = pnand %p378_p6, %p375_p5 }
  0x18   :  { %383 = shalt.err (!%p380_p7)
}
  0x19   :  { %s384_s13 = scalar_lea.vmem %s40_s28, 128  ;;  %p389_p9 = scmp.lt.s32.totalorder %s40_s28, %s40_s28 }
  0x1a   :  { %p385_p8 = scmp.ne.s32.totalorder %s40_s28, %s384_s13  ;;  %p390_p10 = scmp.lt.s32.totalorder %s384_s13, %s384_s13 }
  0x1c   :  { %p391_p11 = por %p390_p10, %p389_p9 }
  0x1e   :  { %p392_p12 = pnand %p391_p11, %p385_p8 }
  0x20   :  { %395 = shalt.err (!%p392_p12)
}
  0x21   :  { %42 = dma.hbm_to_vmem [thread:$0]  %s644_s3, 128, %s40_s28, [#allocation11]  }
  0x22   :  { %s396_s18 = scalar_lea.hbm %s643_s2, 256 }
  0x23   :  { %p397_p13 = scmp.ne.s32.totalorder %s643_s2, %s396_s18  ;;  %p400_p0 = scmp.lt.u32.totalorder %s396_s18, %s643_s2 }
  0x25   :  { %p402_p1 = pnand %p400_p0, %p397_p13 }
  0x27   :  { %405 = shalt.err (!%p402_p1)
}
  0x28   :  { %s406_s23 = scalar_lea.vmem %s566_s1, 256  ;;  %p411_p3 = scmp.lt.s32.totalorder %s566_s1, %s566_s1 }
  0x29   :  { %p407_p2 = scmp.ne.s32.totalorder %s566_s1, %s406_s23  ;;  %p412_p4 = scmp.lt.s32.totalorder %s406_s23, %s406_s23 }
  0x2b   :  { %p413_p5 = por %p412_p4, %p411_p3 }
  0x2d   :  { %p414_p6 = pnand %p413_p5, %p407_p2 }
  0x2f   :  { %417 = shalt.err (!%p414_p6)
}
  0x30   :  { %s521_s3 = smov 128   ;;  %s522_s24 = smov 8  }
  0x31   :  { %32 = dma.hbm_to_vmem [thread:$0]  %s643_s2, 256, %s566_s1, [#allocation8], %s521_s3, %s521_s3, %s522_s24  }
  0x32   :  { %s523_s27 = smov [#allocation12]   ;;  %s418_s30 = scalar_lea.hbm %s645_s4, 2048 }
  0x33   :  { %s48_s0 = sshll.u32 %s523_s27, 4  ;;  %p419_p7 = scmp.ne.s32.totalorder %s645_s4, %s418_s30  ;;  %s49_s0 = int_to_ptr.vmem [resolvable:$true] %s48_s0 }
  0x34   :  { %p422_p8 = scmp.lt.u32.totalorder %s418_s30, %s645_s4 }
  0x36   :  { %p424_p9 = pnand %p422_p8, %p419_p7 }
  0x38   :  { %427 = shalt.err (!%p424_p9)
}
  0x39   :  { %s428_s11 = scalar_lea.vmem %s49_s0, 2048  ;;  %p433_p11 = scmp.lt.s32.totalorder %s49_s0, %s49_s0 }
  0x3a   :  { %p429_p10 = scmp.ne.s32.totalorder %s49_s0, %s428_s11  ;;  %p434_p12 = scmp.lt.s32.totalorder %s428_s11, %s428_s11 }
  0x3c   :  { %p435_p13 = por %p434_p12, %p433_p11 }
  0x3e   :  { %p436_p0 = pnand %p435_p13, %p429_p10 }
  0x40   :  { %439 = shalt.err (!%p436_p0)
}
  0x41   :  { %54 = dma.hbm_to_vmem [thread:$0]  %s645_s4, 2048, %s49_s0, [#allocation11], %s521_s3, %s521_s3, %s522_s24  }
  0x42   :  { %488 = dma.done.wait [#allocation8], 256  }
  0x43   :  { %489 = vsyncadd [#allocation8], 4294967040 }
  0x44   :  { %490 = dma.done.wait [#allocation11], 2176  }
  0x45   :  { %491 = vsyncadd [#allocation11], 4294965120  ;;  %v66_v0 = vld [vmem:[#allocation12] sm:$0xff]  ;;  %v295_v1 = vld [vmem:[#allocation10] ss:$0 sm:$0xff]  ;;  %v494_v58 = vmov 0.0  }
  0x46   :  { %v79_v2 = vld [vmem:[#allocation12 + $0x10] sm:$0xff]  ;;  %v73_v3 = vmul.f32 %v295_v1, %v66_v0  ;;  %v296_v4 = vld [vmem:[#allocation10 + $0x1] ss:$0 sm:$0xff]  ;;  %v92_v5 = vld [vmem:[#allocation12 + $0x20] sm:$0xff]  ;;  %v498_v59 = vmov 0.0   ;;  %v502_v60 = vmov 0.0  }
  0x47   :  { %v297_v6 = vld [vmem:[#allocation10 + $0x2] ss:$0 sm:$0xff]  ;;  %v86_v7 = vmul.f32 %v296_v4, %v79_v2  ;;  %v105_v9 = vld [vmem:[#allocation12 + $0x30] sm:$0xff]  ;;  %v298_v10 = vld [vmem:[#allocation10 + $0x3] ss:$0 sm:$0xff]  ;;  %v506_v61 = vmov 0.0  }
  0x48   :  { %v99_v8 = vmul.f32 %v297_v6, %v92_v5  ;;  %v118_v11 = vld [vmem:[#allocation12 + $0x40] sm:$0xff]  ;;  %v299_v12 = vld [vmem:[#allocation10 + $0x4] ss:$0 sm:$0xff]  ;;  %v112_v14 = vmul.f32 %v298_v10, %v105_v9  ;;  %v131_v15 = vld [vmem:[#allocation12 + $0x50] sm:$0xff]  ;;  %s621_s15 = smov 0  }
  0x49   :  { %v88_v13 = vadd.f32 %v86_v7, %v73_v3  ;;  %v300_v16 = vld [vmem:[#allocation10 + $0x5] ss:$0 sm:$0xff]  ;;  %v67_v17 = vld [vmem:[#allocation12 + $0x8] sm:$0xff]  ;;  %v125_v19 = vmul.f32 %v299_v12, %v118_v11  ;;  %v144_v24 = vld [vmem:[#allocation12 + $0x60] sm:$0xff] }
  0x4a   :  { %v74_v20 = vmul.f32 %v295_v1, %v67_v17  ;;  %v80_v21 = vld [vmem:[#allocation12 + $0x18] sm:$0xff]  ;;  %v93_v22 = vld [vmem:[#allocation12 + $0x28] sm:$0xff]  ;;  %v138_v29 = vmul.f32 %v300_v16, %v131_v15  ;;  %v157_v31 = vld [vmem:[#allocation12 + $0x70] sm:$0xff] }
  0x4b   :  { %v101_v18 = vadd.f32 %v99_v8, %v88_v13  ;;  %v106_v23 = vld [vmem:[#allocation12 + $0x38] sm:$0xff]  ;;  %v87_v26 = vmul.f32 %v296_v4, %v80_v21  ;;  %v100_v27 = vmul.f32 %v297_v6, %v93_v22  ;;  %v119_v30 = vld [vmem:[#allocation12 + $0x48] sm:$0xff]  ;;  %v169_v55 = vld [vmem:[%s646_s5 + $0x8] sm:$0xff] }
  0x4c   :  { %v301_v25 = vld [vmem:[#allocation10 + $0x6] ss:$0 sm:$0xff]  ;;  %v302_v32 = vld [vmem:[#allocation10 + $0x7] ss:$0 sm:$0xff]  ;;  %v113_v34 = vmul.f32 %v298_v10, %v106_v23  ;;  %v126_v39 = vmul.f32 %v299_v12, %v119_v30  ;;  %v145_v42 = vld [vmem:[#allocation12 + $0x68] sm:$0xff] }
  0x4d   :  { %v114_v28 = vadd.f32 %v112_v14, %v101_v18  ;;  %v89_v33 = vadd.f32 %v87_v26, %v74_v20  ;;  %v151_v36 = vmul.f32 %v301_v25, %v144_v24  ;;  %v132_v37 = vld [vmem:[#allocation12 + $0x58] sm:$0xff]  ;;  %v164_v41 = vmul.f32 %v302_v32, %v157_v31  ;;  %v168_v47 = vld [vmem:[%s646_s5] sm:$0xff] }
  0x4e   :  { %v139_v44 = vmul.f32 %v300_v16, %v132_v37  ;;  %v158_v46 = vld [vmem:[#allocation12 + $0x78] sm:$0xff]  ;;  %v152_v49 = vmul.f32 %v301_v25, %v145_v42 }
  0x4f   :  { %v127_v35 = vadd.f32 %v125_v19, %v114_v28  ;;  %v102_v38 = vadd.f32 %v100_v27, %v89_v33  ;;  %v165_v52 = vmul.f32 %v302_v32, %v158_v46 }
  0x51   :  { %v140_v40 = vadd.f32 %v138_v29, %v127_v35  ;;  %v115_v43 = vadd.f32 %v113_v34, %v102_v38 }
  0x53   :  { %v153_v45 = vadd.f32 %v151_v36, %v140_v40  ;;  %v128_v48 = vadd.f32 %v126_v39, %v115_v43 }
  0x55   :  { %v166_v50 = vadd.f32 %v164_v41, %v153_v45  ;;  %v141_v51 = vadd.f32 %v139_v44, %v128_v48 }
  0x57   :  { %v170_v53 = vmul.f32 %v168_v47, %v166_v50  ;;  %v154_v54 = vadd.f32 %v152_v49, %v141_v51 }
  0x59   :  { %172 = vst [vmem:[#allocation2] sm:$0xff] %v170_v53  ;;  %175 = vst [vmem:[#allocation2 + $0x10] sm:$0xff] %v170_v53  ;;  %v167_v56 = vadd.f32 %v165_v52, %v154_v54 }
  0x5b   :  { %v171_v57 = vmul.f32 %v169_v55, %v167_v56 }
  0x5d   :  { %173 = vst [vmem:[#allocation2 + $0x8] sm:$0xff] %v171_v57  ;;  %176 = vst [vmem:[#allocation2 + $0x18] sm:$0xff] %v171_v57 }
  0x5e LB: > { %s190_s16 = ssub.s32 16, %s512_s15  ;;  %s187_s5 = scalar_lea.vmem [#allocation7], %s512_s15  ;;  %s512_s15 = sphi %s621_s15, %s182_s15   ;;  %v508_v61 = vphi %v506_v61, %v507_v61   ;;  %v504_v60 = vphi %v502_v60, %v503_v60   ;;  %v500_v59 = vphi %v498_v59, %v499_v59   ;;  %v496_v58 = vphi %v494_v58, %v495_v58  }
  0x5f   : > { %v303_v62 = vld [vmem:[%s187_s5] ss:$0 sm:$0xff]  ;;  %v304_v63 = vld [vmem:[%s187_s5 + $0x8] ss:$0 sm:$0xff]  ;;  %s191_s17 = scalar_lea.vmem [#allocation2], %s190_s16  ;;  %s182_s15 = sadd.s32 1, %s512_s15  }
  0x60   : > { %p179_p1 = scmp.ge.s32.totalorder %s182_s15, 8  }
  0x61   :  { %s214_s18 = sld [smem:[#allocation6]] (%p179_p1) }
  0x63   :  { %181 = sbr.rel (!%p179_p1) target bundleno = 94 (0x5e), region = 83 }
  0x64   : > { %v192_v0 = vld [vmem:[%s191_s17] sm:$0xff]  ;;  %v193_v1 = vld [vmem:[%s191_s17 + $0x8] sm:$0xff] }
  0x65   : > { %v202_v2 = vmul.f32 %v303_v62, %v192_v0  ;;  %v203_v3 = vmul.f32 %v303_v62, %v193_v1  ;;  %v204_v4 = vmul.f32 %v304_v63, %v192_v0  ;;  %v205_v5 = vmul.f32 %v304_v63, %v193_v1 }
  0x67   : > { %v206_v6 = vadd.f32 %v508_v61, %v202_v2   ;;  %v207_v7 = vadd.f32 %v504_v60, %v203_v3   ;;  %v208_v8 = vadd.f32 %v500_v59, %v204_v4   ;;  %v209_v9 = vadd.f32 %v496_v58, %v205_v5   ;;  %p305_p2 = scmp.ne.s32.totalorder (%p179_p1), %s214_s18, 1 }
  0x69   : > { %v495_v58 = vmov %v209_v9   ;;  %v499_v59 = vmov %v208_v8   ;;  %v503_v60 = vmov %v207_v7   ;;  %v507_v61 = vmov %v206_v6   ;;  %210 = vst [vmem:[#allocation3] sm:$0xff] (%p179_p1), %v206_v6  ;;  %211 = vst [vmem:[#allocation3 + $0x8] sm:$0xff] (%p179_p1), %v207_v7 }
  0x6a   :  { %212 = vst [vmem:[#allocation3 + $0x10] sm:$0xff] %v208_v8  ;;  %213 = vst [vmem:[#allocation3 + $0x18] sm:$0xff] %v209_v9  ;;  %218 = sbr.rel (%p305_p2) target bundleno = 115 (0x73), region = 40  ;;  %s219_s19 = sld [smem:[#allocation5]] (!%p305_p2) }
  0x70   :  { %s220_s20 = scalar_lea.vmem (!%p305_p2), [#allocation3], %s219_s19 }
  0x71   :  { %v221_v10 = vld [vmem:[%s220_s20] sm:$0xff]  ;;  %v222_v11 = vld [vmem:[%s220_s20 + $0x10] sm:$0xff] }
  0x72   :  { %223 = vst [vmem:[#allocation13] sm:$0xff] %v221_v10  ;;  %224 = vst [vmem:[#allocation13 + $0x8] sm:$0xff] %v222_v11 }
  0x73 PF:  { %p306_p3 = scmp.eq.s32.totalorder %s214_s18, 1 }
  0x74   :  { %s514_s21 = smov (!%p306_p3), 0  }
  0x75   :  { %228 = sbr.rel (%p306_p3) target bundleno = 135 (0x87), region = 44 }
  0x7c LB: > { %s235_s22 = sld [smem:[#allocation5 + %s516_s21]]  ;;  %s239_s25 = scalar_lea.vmem [#allocation13], %s516_s21  ;;  %s516_s21 = sphi %s514_s21, %s234_s21  }
  0x7d   : > { %s234_s21 = sadd.s32 1, %s516_s21  }
  0x7e   : > { %p231_p4 = scmp.ge.s32.totalorder %s234_s21, 8  }
  0x80   :  { %233 = sbr.rel (!%p231_p4) target bundleno = 124 (0x7c), region = 94 }
  0x82   : > { %s236_s23 = scalar_lea.vmem [#allocation3], %s235_s22 }
  0x83   : > { %v237_v12 = vld [vmem:[%s236_s23] sm:$0x1]  ;;  %v238_v13 = vld [vmem:[%s236_s23 + $0x10] sm:$0x1] }
  0x84   : > { %240 = vst [vmem:[%s239_s25] sm:$0x1] %v237_v12  ;;  %241 = vst [vmem:[%s239_s25 + $0x8] sm:$0x1] %v238_v13 }
  0x87 PF:  { %s524_s26 = smov [#allocation13]  }
  0x88   :  { %s247_s27 = sshll.u32 %s524_s26, 4  ;;  %s248_s27 = int_to_ptr.vmem [resolvable:$true] %s247_s27 }
  0x89   :  { %s440_s0 = scalar_lea.vmem %s248_s27, 256  ;;  %p445_p6 = scmp.lt.s32.totalorder %s248_s27, %s248_s27 }
  0x8a   :  { %p441_p5 = scmp.ne.s32.totalorder %s248_s27, %s440_s0  ;;  %p446_p7 = scmp.lt.s32.totalorder %s440_s0, %s440_s0 }
  0x8c   :  { %p447_p8 = por %p446_p7, %p445_p6 }
  0x8e   :  { %p448_p9 = pnand %p447_p8, %p441_p5 }
  0x90   :  { %451 = shalt.err (!%p448_p9)
}
  0x91   :  { %s452_s30 = scalar_lea.hbm %s647_s6, 256 }
  0x92   :  { %p453_p10 = scmp.ne.s32.totalorder %s647_s6, %s452_s30  ;;  %p456_p11 = scmp.lt.u32.totalorder %s452_s30, %s647_s6 }
  0x94   :  { %p458_p12 = pnand %p456_p11, %p453_p10 }
  0x96   :  { %461 = shalt.err (!%p458_p12)
}
  0x97   :  { %253 = dma.vmem_to_hbm [thread:$0]  %s248_s27, 256, %s647_s6, [#allocation9], %s521_s3, %s521_s3, %s522_s24  }
  0x98   :  { %492 = dma.done.wait [#allocation9], 256  }
  0x99   :  { %493 = vsyncadd [#allocation9], 4294967040 }
  0x9a   :  { %257 = vsyncpa [#allocation8], 1 }
  0x9b   :  { %258 = vsyncpa [#allocation11], 1 }
  0x9c   :  { %259 = vsyncpa [#allocation9], 1 }

</bundles_post_ra>
